<compile_context>
chip_gen: v7x
topology: tpu7x:2x2x1
jax: 0.10.0
libtpu: 0.0.40
codegen_flags: <defaults>
</compile_context>

<pallas_src>
import functools

import jax
import jax.numpy as jnp
from jax import lax
from jax.experimental import pallas as pl
from jax.experimental.pallas import tpu as pltpu

EPS = 1e-5  # nn.LayerNorm default


def _round_up(v, m):
    return ((v + m - 1) // m) * m


def _prenorm_kernel(x_ref, w_ref, b_ref, o_ref, y_ref):
    """Fused LayerNorm (affine folded into W/b) + Linear tile.

    x_ref : (tm, D)    row tile of flattened [B*S, D] input
    w_ref : (D, tn)    folded weight  gamma[:, None] * W   (bf16, MXU-native)
    b_ref : (1, tn)    folded bias    beta @ W + fn_bias   (f32)
    o_ref : (tm, tn)   output tile
    y_ref : (tm, D)    VMEM scratch: normalized rows (bf16), reused across the
                       inner Dout-tile axis.
    """
    # Normalize once per row tile (first Dout step), reuse for every Dout tile.
    @pl.when(pl.program_id(1) == 0)
    def _():
        x = x_ref[...].astype(jnp.float32)
        inv_d = jnp.float32(1.0 / x.shape[-1])
        mean = jnp.sum(x, axis=-1, keepdims=True) * inv_d
        xc = x - mean
        # two-pass variance: robust when |mean| >> std (no cancellation)
        var = jnp.sum(xc * xc, axis=-1, keepdims=True) * inv_d
        y_ref[...] = (xc * lax.rsqrt(var + EPS)).astype(y_ref.dtype)

    # fn: Linear(D -> Dout) tile on the MXU, bf16 x bf16 -> f32 accumulate.
    out = jnp.dot(y_ref[...], w_ref[...], preferred_element_type=jnp.float32)
    o_ref[...] = (out + b_ref[...]).astype(o_ref.dtype)


@functools.partial(jax.jit, static_argnames=("tm", "tn_max", "out_dtype"))
def prenorm_linear(x, gamma, beta, w, fn_bias, *, tm=512, tn_max=2048,
                   out_dtype=None):
    """x: [B, S, D] -> fn(LayerNorm(x)) with fn = Linear(D, Dout).

    out_dtype=jnp.bfloat16 halves store/writeback bytes (recommended on v5e)
    when the consumer tolerates it; default mirrors x.dtype.
    """
    B, S, D = x.shape
    Dout = w.shape[1]
    rows = B * S
    if out_dtype is None:
        out_dtype = x.dtype

    # ---- fold LayerNorm affine into the Linear (exact) ---------------------
    w32 = w.astype(jnp.float32)
    w_folded = gamma.astype(jnp.float32)[:, None] * w32
    b_folded = beta.astype(jnp.float32) @ w32 + fn_bias.astype(jnp.float32)

    # ---- lane-dense output: pad Dout to a multiple of 128 ------------------
    Dout_pad = _round_up(Dout, 128)
    if Dout_pad != Dout:
        w_folded = jnp.pad(w_folded, ((0, 0), (0, Dout_pad - Dout)))
        b_folded = jnp.pad(b_folded, (0, Dout_pad - Dout))
    w_bf = w_folded.astype(jnp.bfloat16)       # MXU full-rate, half the VMEM
    b2 = b_folded.reshape(1, Dout_pad)

    # ---- N (Dout) tiling so very large weights still fit VMEM (v7x) --------
    if Dout_pad <= tn_max:
        tn = Dout_pad
    else:
        tn = max((d for d in range(128, tn_max + 1, 128) if Dout_pad % d == 0),
                 default=128)
    grid_n = Dout_pad // tn
    w_bufs = 1 if grid_n == 1 else 2           # invariant W -> single buffer

    # ---- per-generation VMEM limit + row-tile budget ------------------------
    try:
        vmem_cap = int(pltpu.get_tpu_info().vmem_capacity_bytes)
    except Exception:
        vmem_cap = 64 * 1024 * 1024            # conservative (v7x per-TC size)
    vmem_limit = min(vmem_cap * 3 // 4, 112 * 1024 * 1024)  # ~48 MiB v7x, ~96 MiB v5e/v6e

    x_bytes = jnp.dtype(x.dtype).itemsize
    o_bytes = jnp.dtype(out_dtype).itemsize
    sublane = {1: 32, 2: 16, 4: 8}.get(x_bytes, 8)   # dtype-correct row rounding

    def _footprint(tm_v):
        return (2 * tm_v * D * x_bytes          # x tile, double-buffered
                + 2 * tm_v * tn * o_bytes       # out tile, double-buffered
                + w_bufs * D * tn * 2           # folded W tile (bf16)
                + w_bufs * tn * 4               # folded bias tile
                + tm_v * D * 2)                 # y scratch (bf16)

    tm_cap = max(sublane, _round_up(tm, sublane))
    while tm_cap > sublane and _footprint(tm_cap) > int(vmem_limit * 0.6):
        tm_cap = max(sublane, _round_up(tm_cap // 2, sublane))

    # ---- row tiling (avoid pad-to-tile HBM round trip when possible) -------
    rows_s = _round_up(rows, sublane)
    tm_eff = _round_up(min(tm_cap, rows_s), sublane)
    # v7x megacore guard: keep >=2 steps on the 'parallel' row axis when rows
    # are big enough to be worth splitting (one extra ~0.35us step elsewhere).
    if tm_eff >= rows_s and rows_s >= 256:
        tm_eff = _round_up((rows_s + 1) // 2, sublane)
    if rows_s % tm_eff != 0:
        divisors = [d for d in range(sublane, tm_eff + 1, sublane)
                    if rows_s % d == 0]
        best = max(divisors) if divisors else sublane
        if best >= max(sublane, tm_eff // 4):
            tm_eff = best                       # divides rows_s -> no tile pad
    rows_pad = _round_up(rows_s, tm_eff)
    grid_m = rows_pad // tm_eff

    x2 = x.reshape(rows, D)
    if rows_pad != rows:
        # Only to the sublane/tile boundary; padded rows produce finite values
        # (LayerNorm of zeros) and are sliced off below.
        x2 = jnp.pad(x2, ((0, rows_pad - rows), (0, 0)))

    # ---- BlockSpecs ----------------------------------------------------------
    def _const_spec(shape, index_map):
        # Grid-invariant operand: single-buffer (default 2-deep pipelining only
        # doubles its VMEM footprint without hiding any DMA).
        if w_bufs == 1:
            try:
                return pl.BlockSpec(shape, index_map,
                                    pipeline_mode=pl.Buffered(1))
            except TypeError:
                pass
        return pl.BlockSpec(shape, index_map)

    x_spec = pl.BlockSpec((tm_eff, D), lambda i, j: (i, 0))   # re-fetch elided over j
    w_spec = _const_spec((D, tn), lambda i, j: (0, j))
    b_spec = _const_spec((1, tn), lambda i, j: (0, j))
    o_spec = pl.BlockSpec((tm_eff, tn), lambda i, j: (i, j))

    out2 = pl.pallas_call(
        _prenorm_kernel,
        out_shape=jax.ShapeDtypeStruct((rows_pad, Dout_pad), out_dtype),
        grid_spec=pltpu.PrefetchScalarGridSpec(
            num_scalar_prefetch=0,
            grid=(grid_m, grid_n),
            in_specs=[x_spec, w_spec, b_spec],
            out_specs=o_spec,
            scratch_shapes=[pltpu.VMEM((tm_eff, D), jnp.bfloat16)],
        ),
        compiler_params=pltpu.CompilerParams(
            dimension_semantics=("parallel", "arbitrary"),
            vmem_limit_bytes=vmem_limit,
        ),
    )(x2, w_bf, b2)

    if rows_pad != rows:
        out2 = out2[:rows]
    if Dout_pad != Dout:
        out2 = out2[:, :Dout]
    return out2.reshape(B, S, Dout)


def _reference(x, gamma, beta, w, fn_bias):
    x32 = x.astype(jnp.float32)
    mean = jnp.mean(x32, axis=-1, keepdims=True)
    var = jnp.mean((x32 - mean) ** 2, axis=-1, keepdims=True)
    xhat = (x32 - mean) / jnp.sqrt(var + EPS)
    y = xhat * gamma + beta
    return (y @ w + fn_bias).astype(x.dtype)


if __name__ == "__main__":
    key = jax.random.PRNGKey(0)
    # Small but lane-dense shapes: D = Dout = 128 keeps the output last dim a
    # multiple of 128; rows = 16 keeps the whole demo in a single grid step.
    B, S, D = 2, 8, 128
    Dout = D

    kx, kg, kb, kw, kfb = jax.random.split(key, 5)
    x = jax.random.normal(kx, (B, S, D), dtype=jnp.float32)

    # Non-trivial LayerNorm affine to exercise the gamma/beta -> W'/b' folding.
    gamma = 1.0 + 0.1 * jax.random.normal(kg, (D,), dtype=jnp.float32)
    beta = 0.1 * jax.random.normal(kb, (D,), dtype=jnp.float32)
    w = jax.random.normal(kw, (D, Dout), dtype=jnp.float32) * 0.02
    fn_bias = jax.random.normal(kfb, (Dout,), dtype=jnp.float32) * 0.02

    out = prenorm_linear(x, gamma, beta, w, fn_bias)
    jax.block_until_ready(out)

    ref = _reference(x, gamma, beta, w, fn_bias)
    assert out.shape == (B, S, Dout)
    # bf16 MXU operands (f32 accumulation) -> slightly relaxed tolerance vs f32.
    assert jnp.allclose(out, ref, atol=2e-2, rtol=2e-2), "mismatch vs reference"

    # TODO(synk): PreNorm wraps an arbitrary `fn`; only fn = Linear is fused here.
    print("KERNEL_OK")
</pallas_src>

<mosaic_0001>
module attributes {stable_mosaic.version = 11 : i64} {
  func.func @_prenorm_kernel(%arg0: i32, %arg1: i32, %arg2: memref<16x128xf32, #tpu.memory_space<vmem>>, %arg3: memref<128x128xbf16, #tpu.memory_space<vmem>>, %arg4: memref<1x128xf32, #tpu.memory_space<vmem>>, %arg5: memref<16x128xf32, #tpu.memory_space<vmem>>, %arg6: memref<16x128xbf16, #tpu.memory_space<vmem>>) attributes {dimension_semantics = [#tpu.dimension_semantics<parallel>, #tpu.dimension_semantics<arbitrary>], iteration_bounds = array<i64: 1, 1>, scalar_prefetch = 0 : i64, scratch_operands = 1 : i64, tpu.core_type = #tpu.core_type<tc>, window_params = [{transform_indices = @transform_0, window_bounds = array<i64: 16, 128>}, {pipeline_mode = #tpu.pipeline_mode<synchronous>, transform_indices = @transform_1, window_bounds = array<i64: 128, 128>}, {pipeline_mode = #tpu.pipeline_mode<synchronous>, transform_indices = @transform_2, window_bounds = array<i64: 1, 128>}, {transform_indices = @transform_3, window_bounds = array<i64: 16, 128>}]} {
    %c0_i32 = arith.constant 0 : i32
    %0 = arith.cmpi eq, %arg1, %c0_i32 : i32
    %1 = arith.extui %0 : i1 to i32
    %c0_i32_0 = arith.constant 0 : i32
    %2 = arith.cmpi ne, %1, %c0_i32_0 : i32
    scf.if %2 {
      %c0_8 = arith.constant 0 : index
      %c0_9 = arith.constant 0 : index
      %10 = vector.load %arg2[%c0_8, %c0_9] : memref<16x128xf32, #tpu.memory_space<vmem>>, vector<16x128xf32>
      %cst_10 = arith.constant dense<0.000000e+00> : vector<16xf32>
      %11 = vector.multi_reduction <add>, %10, %cst_10 [1] : vector<16x128xf32> to vector<16xf32>
      %12 = vector.shape_cast %11 : vector<16xf32> to vector<16x1xf32>
      %cst_11 = arith.constant 7.812500e-03 : f32
      %13 = vector.broadcast %cst_11 : f32 to vector<16x1xf32>
      %14 = arith.mulf %12, %13 : vector<16x1xf32>
      %15 = vector.broadcast %14 : vector<16x1xf32> to vector<16x128xf32>
      %16 = arith.subf %10, %15 : vector<16x128xf32>
      %17 = arith.mulf %16, %16 : vector<16x128xf32>
      %cst_12 = arith.constant dense<0.000000e+00> : vector<16xf32>
      %18 = vector.multi_reduction <add>, %17, %cst_12 [1] : vector<16x128xf32> to vector<16xf32>
      %19 = vector.shape_cast %18 : vector<16xf32> to vector<16x1xf32>
      %cst_13 = arith.constant 7.812500e-03 : f32
      %20 = vector.broadcast %cst_13 : f32 to vector<16x1xf32>
      %21 = arith.mulf %19, %20 : vector<16x1xf32>
      %cst_14 = arith.constant 9.99999974E-6 : f32
      %22 = vector.broadcast %cst_14 : f32 to vector<16x1xf32>
      %23 = arith.addf %21, %22 : vector<16x1xf32>
      %24 = math.rsqrt %23 : vector<16x1xf32>
      %25 = vector.broadcast %24 : vector<16x1xf32> to vector<16x128xf32>
      %26 = arith.mulf %16, %25 : vector<16x128xf32>
      %27 = arith.truncf %26 : vector<16x128xf32> to vector<16x128xbf16>
      %c0_15 = arith.constant 0 : index
      %c0_16 = arith.constant 0 : index
      %28 = vector.load %arg6[%c0_15, %c0_16] : memref<16x128xbf16, #tpu.memory_space<vmem>>, vector<16x128xbf16>
      tpu.vector_store %arg6[%c0_15, %c0_16], %27 {strides = array<i32>} : memref<16x128xbf16, #tpu.memory_space<vmem>>, vector<16x128xbf16>,
    } else {
    }
    %c0 = arith.constant 0 : index
    %c0_1 = arith.constant 0 : index
    %3 = vector.load %arg6[%c0, %c0_1] : memref<16x128xbf16, #tpu.memory_space<vmem>>, vector<16x128xbf16>
    %c0_2 = arith.constant 0 : index
    %c0_3 = arith.constant 0 : index
    %4 = vector.load %arg3[%c0_2, %c0_3] : memref<128x128xbf16, #tpu.memory_space<vmem>>, vector<128x128xbf16>
    %cst = arith.constant dense<0.000000e+00> : vector<16x128xf32>
    %5 = tpu.matmul %3, %4, %cst {dimension_numbers = #tpu.dot_dimension_numbers<[1], [0], [0], [1], [0, 0, 1, 1], [], []>} : vector<16x128xbf16>, vector<128x128xbf16>, vector<16x128xf32> -> vector<16x128xf32>
    %c0_4 = arith.constant 0 : index
    %c0_5 = arith.constant 0 : index
    %6 = vector.load %arg4[%c0_4, %c0_5] : memref<1x128xf32, #tpu.memory_space<vmem>>, vector<1x128xf32>
    %7 = vector.broadcast %6 : vector<1x128xf32> to vector<16x128xf32>
    %8 = arith.addf %5, %7 : vector<16x128xf32>
    %c0_6 = arith.constant 0 : index
    %c0_7 = arith.constant 0 : index
    %9 = vector.load %arg5[%c0_6, %c0_7] : memref<16x128xf32, #tpu.memory_space<vmem>>, vector<16x128xf32>
    tpu.vector_store %arg5[%c0_6, %c0_7], %8 {strides = array<i32>} : memref<16x128xf32, #tpu.memory_space<vmem>>, vector<16x128xf32>,
    return
  }
  func.func @transform_0(%arg0: i32, %arg1: i32) -> (i32, i32) {
    %c0_i32 = arith.constant 0 : i32
    %c0_i32_0 = arith.constant 0 : i32
    return %arg0, %c0_i32 : i32, i32
  }
  func.func @transform_1(%arg0: i32, %arg1: i32) -> (i32, i32) {
    %c0_i32 = arith.constant 0 : i32
    %c0_i32_0 = arith.constant 0 : i32
    return %c0_i32, %arg1 : i32, i32
  }
  func.func @transform_2(%arg0: i32, %arg1: i32) -> (i32, i32) {
    %c0_i32 = arith.constant 0 : i32
    %c0_i32_0 = arith.constant 0 : i32
    return %c0_i32, %arg1 : i32, i32
  }
  func.func @transform_3(%arg0: i32, %arg1: i32) -> (i32, i32) {
    %c0_i32 = arith.constant 0 : i32
    return %arg0, %arg1 : i32, i32
  }
}

</mosaic_0001>

<bundles_post_ra>
// kernel: prenorm_linear.1
= control target key start
LH: loop header
LB: loop body
LE: loop exit
PB: predicated region body
PF: predicated region fallthrough
CT: control target
= control target key end

     0   :  { %s326_s0 = inlined_call_operand.vmem [shape: f32[16,128], index: 0, kind: input, shape index: {}]   ;;  %s327_s1 = inlined_call_operand.vmem [shape: bf16[128,128], index: 1, kind: input, shape index: {}]   ;;  %s328_s2 = inlined_call_operand.vmem [shape: f32[1,128], index: 2, kind: input, shape index: {}]   ;;  %s329_s3 = inlined_call_operand.hbm [shape: f32[16,128], index: 3, kind: output, shape index: {}]  }
   0x1   :  { %v20_v0 = vld [vmem:[%s326_s0] sm:$0xff]  ;;  %v21_v1 = vld [vmem:[%s326_s0 + $0x8] sm:$0xff] }
   0x2   :  { %22 = vadd.xlane.f32.xlu0 %v20_v0 }
   0x6   :  { %24 = vadd.xlane.f32.xlu0 %v21_v1 }
   0x7   :  { %8 = vsyncpa [#allocation4], 0  ;;  %v220_v2 = vld [vmem:[%s327_s1] sm:$0xff]   ;;  %v256_v3 = vmov 0.0   ;;  %v221_v4 = vld [vmem:[%s327_s1 + $0x8] sm:$0xff]   ;;  %vm257_vm0 = vmmov 0  }
   0x8   :  { %195 = vmatprep.subr.bf16.mxu0 %v256_v3  ;;  %v222_v13 = vld [vmem:[%s327_s1 + $0x10] sm:$0xff]   ;;  %v223_v14 = vld [vmem:[%s327_s1 + $0x18] sm:$0xff]   ;;  %v224_v15 = vld [vmem:[%s327_s1 + $0x20] sm:$0xff]   ;;  %211 = vmatprep.mubr.msk.bf16.mxu0 %vm257_vm0, %v256_v3 }
   0x9   :  { %196 = vmatpush3.bf16.msra.mxu0 %v220_v2  ;;  %v225_v16 = vld [vmem:[%s327_s1 + $0x28] sm:$0xff]   ;;  %v226_v17 = vld [vmem:[%s327_s1 + $0x30] sm:$0xff]   ;;  %v227_v18 = vld [vmem:[%s327_s1 + $0x38] sm:$0xff]   ;;  %s258_s1 = smov [#allocation3]  }
   0xa   :  { %197 = vmatprep.subr.bf16.mxu0 %v256_v3  ;;  %v177_v30 = vld [vmem:[%s328_s2] ss:$0 sm:$0xff]  ;;  %s166_s6 = sshll.u32 %s258_s1, 4  ;;  %s167_s6 = int_to_ptr.vmem [resolvable:$true] %s166_s6 }
   0xb   :  { %s232_s7 = scalar_lea.vmem %s167_s6, 256  ;;  %p237_p1 = scmp.lt.s32.totalorder %s167_s6, %s167_s6 }
   0xc   :  { %p233_p0 = scmp.ne.s32.totalorder %s167_s6, %s232_s7  ;;  %p238_p2 = scmp.lt.s32.totalorder %s232_s7, %s232_s7 }
   0xd   :  { %198 = vmatpush3.bf16.msra.mxu0 %v221_v4 }
   0xe   :  { %199 = vmatprep.subr.bf16.mxu0 %v256_v3  ;;  %p239_p3 = por %p238_p2, %p237_p1 }
  0x10   :  { %p240_p4 = pnand %p239_p3, %p233_p0 }
  0x11   :  { %200 = vmatpush3.bf16.msra.mxu0 %v222_v13 }
  0x12   :  { %201 = vmatprep.subr.bf16.mxu0 %v256_v3 }
  0x15   :  { %202 = vmatpush3.bf16.msra.mxu0 %v223_v14 }
  0x16   :  { %203 = vmatprep.subr.bf16.mxu0 %v256_v3 }
  0x19   :  { %204 = vmatpush3.bf16.msra.mxu0 %v224_v15 }
  0x1a   :  { %205 = vmatprep.subr.bf16.mxu0 %v256_v3 }
  0x1d   :  { %206 = vmatpush3.bf16.msra.mxu0 %v225_v16 }
  0x1e   :  { %207 = vmatprep.subr.bf16.mxu0 %v256_v3 }
  0x21   :  { %208 = vmatpush3.bf16.msra.mxu0 %v226_v17 }
  0x22   :  { %209 = vmatprep.subr.bf16.mxu0 %v256_v3 }
  0x25   :  { %210 = vmatpush3.bf16.msra.mxu0 %v227_v18 }
  0x8f   :  { %v23_v5 = vpop.xlane.xlu0 %22 }
  0x90   :  { %v26_v6 = vmul.f32 0.0078125, %v23_v5 }
  0x92   :  { %v28_v7 = vsub.f32 %v20_v0, %v26_v6 }
  0x93   :  { %v25_v8 = vpop.xlane.xlu0 %24 }
  0x94   :  { %v27_v9 = vmul.f32 0.0078125, %v25_v8  ;;  %v30_v10 = vmul.f32 %v28_v7, %v28_v7 }
  0x96   :  { %v29_v11 = vsub.f32 %v21_v1, %v27_v9  ;;  %32 = vadd.xlane.f32.xlu1 %v30_v10 }
  0x98   :  { %v31_v12 = vmul.f32 %v29_v11, %v29_v11 }
  0x9a   :  { %34 = vadd.xlane.f32.xlu1 %v31_v12 }
 0x123   :  { %v33_v19 = vpop.xlane.xlu1 %32 }
 0x124   :  { %v36_v20 = vmul.f32 0.0078125, %v33_v19 }
 0x126   :  { %v38_v21 = vadd.f32 1e-05, %v36_v20 }
 0x127   :  { %v35_v22 = vpop.xlane.xlu1 %34 }
 0x128   :  { %v37_v23 = vmul.f32 0.0078125, %v35_v22  ;;  %228 = vrsqrt.f32 %v38_v21 }
 0x12a   :  { %v39_v24 = vadd.f32 1e-05, %v37_v23 }
 0x12c   :  { %230 = vrsqrt.f32 %v39_v24 }
 0x132   :  { %v229_v25 = vpop.eup %228 }
 0x133   :  { %v42_v27 = vmul.f32 %v229_v25, %v28_v7 }
 0x136   :  { %v231_v26 = vpop.eup %230 }
 0x137   :  { %v43_v28 = vmul.f32 %v231_v26, %v29_v11 }
 0x139   :  { %v44_v29 = vpack.c.bf16 %v43_v28, %v42_v27 }
 0x13b   :  { %212 = vmatmul.mubr.bf16.vlgmr.msra.gmra.mrb[0].mxu0 %v44_v29 }
 0x20e   :  { %v152_v31 = vpop.f32.mrb[0].mxu0 }
 0x20f   :  { %v153_v32 = vadd.f32 %v177_v30, %v152_v31  ;;  %v213_v33 = vpop.f32.mrb[1].mxu0 }
 0x210   :  { %v155_v34 = vpop.f32.mrb[2].mxu0 }
 0x211   :  { %159 = vst [vmem:[#allocation3] sm:$0xff] %v153_v32  ;;  %v156_v35 = vadd.f32 %v177_v30, %v155_v34  ;;  %v214_v36 = vpop.f32.mrb[3].mxu0 }
 0x213   :  { %160 = vst [vmem:[#allocation3 + $0x8] sm:$0xff] %v156_v35 }
 0x214   :  { %243 = shalt.err (!%p240_p4)
}
 0x215   :  { %s244_s9 = scalar_lea.hbm %s329_s3, 256 }
 0x216   :  { %p245_p5 = scmp.ne.s32.totalorder %s329_s3, %s244_s9  ;;  %p248_p6 = scmp.lt.u32.totalorder %s244_s9, %s329_s3 }
 0x218   :  { %p250_p7 = pnand %p248_p6, %p245_p5 }
 0x21a   :  { %253 = shalt.err (!%p250_p7)
}
 0x21b   :  { %s259_s14 = smov 128   ;;  %s260_s15 = smov 8  }
 0x21c   :  { %172 = dma.vmem_to_hbm [thread:$0]  %s167_s6, 256, %s329_s3, [#allocation4], %s259_s14, %s259_s14, %s260_s15  }
 0x21d   :  { %254 = dma.done.wait [#allocation4], 256  }
 0x21e   :  { %255 = vsyncadd [#allocation4], 4294967040 }
 0x21f   :  { %176 = vsyncpa [#allocation4], 1 }

</bundles_post_ra>
